<compile_context>
chip_gen: v6e
topology: v6e:2x2x1
jax: 0.10.0
libtpu: 0.0.40
codegen_flags: <defaults>
</compile_context>

<pallas_src>
import functools
import math

import jax
import jax.numpy as jnp
from jax import lax
from jax.experimental import pallas as pl
from jax.experimental.pallas import tpu as pltpu


# --------------------------------------------------------------------------- #
# Kernel 1: fused QKV projection                                              #
# --------------------------------------------------------------------------- #
def _qkv_proj_kernel(x_ref, w_ref, qkv_ref, *, num_heads, head_size):
    # x_ref   : (1, Tm, E)         one row tile of one batch element
    # w_ref   : (E, 3*H*Dh)        resident packed [Wq*scale | Wk | Wv] slab
    # qkv_ref : (1, 3*H, Tm, Dh)   head-aligned output layout
    x = x_ref[0].astype(w_ref.dtype)                        # cast once (bf16 path)
    qkv = jnp.dot(x, w_ref[...], preferred_element_type=jnp.float32)  # (Tm, 3*H*Dh)
    # One relayout pass splitting the lane axis into head-aligned channels.
    for j in range(3 * num_heads):
        qkv_ref[0, j] = qkv[:, j * head_size:(j + 1) * head_size].astype(qkv_ref.dtype)


# --------------------------------------------------------------------------- #
# Kernel 2: flash-style causal attention (online softmax)                     #
# --------------------------------------------------------------------------- #
def _flash_attn_kernel(q_ref, k_ref, v_ref, o_ref, m_ref, l_ref, acc_ref,
                       *, head_size, approx_reciprocal):
    # q_ref : (1, 1, Tq, Dh)   k_ref/v_ref : (1, 1, Tkv, Dh)
    # o_ref : (1, Tq, H*Dh)    resident across the h and kv grid axes
    qi = pl.program_id(1)
    h = pl.program_id(2)
    kv = pl.program_id(3)

    @pl.when(kv == 0)
    def _init():
        m_ref[...] = jnp.full(m_ref.shape, -jnp.inf, jnp.float32)
        l_ref[...] = jnp.zeros(l_ref.shape, jnp.float32)
        acc_ref[...] = jnp.zeros(acc_ref.shape, jnp.float32)

    def _update(mask_diag):
        q = q_ref[0, 0]                                     # (Tq, Dh), store dtype
        k = k_ref[0, 0]                                     # (Tkv, Dh)
        v = v_ref[0, 0]                                     # (Tkv, Dh)
        # q @ k^T contracting the last dims (no explicit transpose); f32 scores.
        s = lax.dot_general(q, k, (((1,), (1,)), ((), ())),
                            preferred_element_type=jnp.float32)        # (Tq, Tkv)
        if mask_diag:
            # Diagonal block only (Tq == Tkv) -> the mask is a static lower triangle.
            row = lax.broadcasted_iota(jnp.int32, s.shape, 0)
            col = lax.broadcasted_iota(jnp.int32, s.shape, 1)
            s = jnp.where(col <= row, s, -jnp.inf)
        m_prev = m_ref[...]
        m_new = jnp.maximum(m_prev, jnp.max(s, axis=-1, keepdims=True))
        alpha = jnp.exp(m_prev - m_new)                     # 0 on the first block
        p = jnp.exp(s - m_new)                              # f32 softmax numerator
        l_ref[...] = alpha * l_ref[...] + jnp.sum(p, axis=-1, keepdims=True)
        acc_ref[...] = alpha * acc_ref[...] + jnp.dot(
            p.astype(v.dtype), v, preferred_element_type=jnp.float32)
        m_ref[...] = m_new

    # Strictly-below-diagonal blocks: fully unmasked, no iota / where.
    @pl.when(kv < qi)
    def _interior():
        _update(mask_diag=False)

    # Diagonal block: the only one that needs the causal mask.
    @pl.when(kv == qi)
    def _diag():
        _update(mask_diag=True)

    # Blocks with kv > qi are fully masked: no compute (and no DMA — the kv
    # index_map is clamped so the block index does not change).

    @pl.when(kv == pl.num_programs(3) - 1)
    def _finalize():
        l = l_ref[...]
        inv_l = pl.reciprocal(l, approx=True) if approx_reciprocal else 1.0 / l
        out = acc_ref[...] * inv_l
        # Stream this head's slice into the lane-dense (Tq, H*Dh) resident block.
        o_ref[0, :, pl.ds(h * head_size, head_size)] = out.astype(o_ref.dtype)


# --------------------------------------------------------------------------- #
# Wrapper                                                                     #
# --------------------------------------------------------------------------- #
def multi_head_attention(x, wq, wk, wv, *, matmul_dtype=jnp.bfloat16,
                         block_q=256, approx_reciprocal=False):
    """Causal multi-head self-attention matching MultiHead.forward (eval mode).

    x        : (B, T, E)
    wq/wk/wv : (H, E, Dh) per-head projection weights (x @ W layout)
    returns  : (B, T, H*Dh) == torch.cat([head(x) for head in heads], dim=-1)

    matmul_dtype : dtype fed to the MXU (and qkv HBM storage).  bf16 by default
                   (v5e/v6e/v7x MXU native); None keeps exact f32 numerics.
    block_q      : Tq == Tkv tile.  256 fills the 256-wide v6e/v7x MXU; v6e
                   (128 MiB VMEM) can afford 512-1024, v7x (64 MiB) should be
                   re-derived; v5e wants multiples of 128.
    """
    B, T, E = x.shape
    H, E2, Dh = wq.shape
    assert E2 == E and wk.shape == wq.shape and wv.shape == wq.shape
    hd = H * Dh

    store_dtype = x.dtype if matmul_dtype is None else matmul_dtype

    # Pack per-head weights once: (H, E, Dh) -> (E, H*Dh), concat q|k|v.
    # Fold 1/sqrt(embed_size) into Wq: scale-then-mask == mask-then-scale because
    # masked scores are -inf either way (mirrors the module's unusual 1/sqrt(E),
    # not 1/sqrt(Dh), convention).
    def _stack(wh):
        return jnp.transpose(wh, (1, 0, 2)).reshape(E, hd)

    w_all = jnp.concatenate(
        [_stack(wq) * (1.0 / math.sqrt(float(E))), _stack(wk), _stack(wv)],
        axis=-1).astype(store_dtype)

    # Tq == Tkv is required by the causal block-skip logic.
    tile = block_q if (T % block_q == 0 and T >= block_q) else T
    n_q = T // tile
    n_kv = T // tile

    # ---------------- Kernel 1: fused QKV projection ---------------- #
    proj = pl.pallas_call(
        functools.partial(_qkv_proj_kernel, num_heads=H, head_size=Dh),
        out_shape=jax.ShapeDtypeStruct((B, 3 * H, T, Dh), store_dtype),
        grid_spec=pltpu.PrefetchScalarGridSpec(
            num_scalar_prefetch=0,
            grid=(B, n_q),
            in_specs=[
                pl.BlockSpec((1, tile, E), lambda b, t: (b, t, 0)),
                # Resident packed weights (constant index map -> fetched once).
                pl.BlockSpec((E, 3 * hd), lambda b, t: (0, 0)),
            ],
            out_specs=pl.BlockSpec((1, 3 * H, tile, Dh), lambda b, t: (b, 0, t, 0)),
        ),
        compiler_params=pltpu.CompilerParams(
            dimension_semantics=("parallel", "parallel"),
            vmem_limit_bytes=64 * 1024 * 1024,
        ),
        cost_estimate=pl.CostEstimate(
            flops=int(2 * B * T * E * 3 * hd),
            transcendentals=0,
            bytes_accessed=int(x.size * x.dtype.itemsize
                               + w_all.size * jnp.dtype(store_dtype).itemsize
                               + B * 3 * hd * T * jnp.dtype(store_dtype).itemsize),
        ),
    )(x, w_all)

    # ---------------- Kernel 2: flash attention ---------------- #
    num_blocks = n_q * (n_q + 1) // 2                        # causal lower triangle
    attn_flops = 4 * B * H * Dh * num_blocks * tile * tile   # QK^T + PV

    out = pl.pallas_call(
        functools.partial(_flash_attn_kernel, head_size=Dh,
                          approx_reciprocal=approx_reciprocal),
        out_shape=jax.ShapeDtypeStruct((B, T, hd), x.dtype),
        grid_spec=pltpu.PrefetchScalarGridSpec(
            num_scalar_prefetch=0,
            grid=(B, n_q, H, n_kv),
            in_specs=[
                # q tile for head h: resident across the kv axis (no refetch).
                pl.BlockSpec((1, 1, tile, Dh), lambda b, q, h, k: (b, h, q, 0)),
                # k / v tiles; index clamped to the last causally-needed block so
                # fully-masked blocks above the diagonal trigger no DMA at all.
                pl.BlockSpec((1, 1, tile, Dh),
                             lambda b, q, h, k: (b, H + h, jnp.minimum(k, q), 0)),
                pl.BlockSpec((1, 1, tile, Dh),
                             lambda b, q, h, k: (b, 2 * H + h, jnp.minimum(k, q), 0)),
            ],
            # Lane-dense (Tq, H*Dh) output block, resident across the h and kv axes.
            out_specs=pl.BlockSpec((1, tile, hd), lambda b, q, h, k: (b, q, 0)),
            scratch_shapes=[
                pltpu.VMEM((tile, 1), jnp.float32),     # running max  m
                pltpu.VMEM((tile, 1), jnp.float32),     # running sum  l
                pltpu.VMEM((tile, Dh), jnp.float32),    # output accumulator
            ],
        ),
        compiler_params=pltpu.CompilerParams(
            dimension_semantics=("parallel", "parallel", "arbitrary", "arbitrary"),
            # TODO(synk): derive per generation (v7x has 64 MiB VMEM vs 128 on v5e/v6e).
            vmem_limit_bytes=64 * 1024 * 1024,
        ),
        cost_estimate=pl.CostEstimate(
            flops=int(attn_flops),
            transcendentals=int(B * H * num_blocks * tile * tile),
            bytes_accessed=int(proj.size * jnp.dtype(store_dtype).itemsize
                               + B * T * hd * x.dtype.itemsize),
        ),
    )(proj, proj, proj)
    return out


# --------------------------------------------------------------------------- #
# Pure-JAX reference (HIGHEST precision so it matches the torch f32 semantics)#
# --------------------------------------------------------------------------- #
def _reference(x, wq, wk, wv):
    B, T, E = x.shape
    H, _, Dh = wq.shape
    hp = jax.lax.Precision.HIGHEST
    tril = jnp.tril(jnp.ones((T, T), dtype=bool))
    outs = []
    for h in range(H):
        q = jnp.einsum("bte,ed->btd", x, wq[h], precision=hp)
        k = jnp.einsum("bte,ed->btd", x, wk[h], precision=hp)
        v = jnp.einsum("bte,ed->btd", x, wv[h], precision=hp)
        s = jnp.einsum("bqd,bkd->bqk", q, k, precision=hp)
        s = jnp.where(tril, s, -jnp.inf)
        s = s / math.sqrt(float(E))
        p = jax.nn.softmax(s, axis=-1)
        outs.append(jnp.einsum("bqk,bkd->bqd", p, v, precision=hp))
    return jnp.concatenate(outs, axis=-1)


if __name__ == "__main__":
    # Small shapes consistent with the module: embed_size=32, num_heads=4 -> head_size=8.
    B, T, E, H = 2, 8, 32, 4
    Dh = E // H

    key = jax.random.PRNGKey(0)
    kx, kq, kk, kv = jax.random.split(key, 4)
    x = jax.random.normal(kx, (B, T, E), dtype=jnp.float32)
    # nn.Linear(E, Dh, bias=False) weight is (Dh, E); stored transposed (E, Dh)
    # per head, stacked over heads: (H, E, Dh).
    scale = 1.0 / math.sqrt(E)
    wq = jax.random.uniform(kq, (H, E, Dh), jnp.float32, -scale, scale)
    wk = jax.random.uniform(kk, (H, E, Dh), jnp.float32, -scale, scale)
    wv = jax.random.uniform(kv, (H, E, Dh), jnp.float32, -scale, scale)

    ref = _reference(x, wq, wk, wv)

    # Exact-parity path: f32 MXU operands, exact softmax reciprocal.
    out_f32 = jax.block_until_ready(
        multi_head_attention(x, wq, wk, wv, matmul_dtype=None))
    assert out_f32.shape == (B, T, E), out_f32.shape
    assert jnp.allclose(out_f32, ref, atol=5e-3, rtol=5e-3), "f32 path mismatch"

    # Default perf path: bf16 MXU operands (softmax stays f32) -> looser tolerance.
    out_bf16 = jax.block_until_ready(multi_head_attention(x, wq, wk, wv))
    assert out_bf16.shape == (B, T, E), out_bf16.shape
    assert jnp.allclose(out_bf16, ref, atol=2e-2, rtol=2e-2), "bf16 path mismatch"

    print("KERNEL_OK")
</pallas_src>

<mosaic_0001>
module attributes {stable_mosaic.version = 11 : i64} {
  func.func @_qkv_proj_kernel(%arg0: i32, %arg1: i32, %arg2: memref<1x8x32xf32, #tpu.memory_space<vmem>>, %arg3: memref<32x96xf32, #tpu.memory_space<vmem>>, %arg4: memref<1x12x8x8xf32, #tpu.memory_space<vmem>>) attributes {dimension_semantics = [#tpu.dimension_semantics<parallel>, #tpu.dimension_semantics<parallel>], iteration_bounds = array<i64: 2, 1>, scalar_prefetch = 0 : i64, scratch_operands = 0 : i64, tpu.core_type = #tpu.core_type<tc>, window_params = [{transform_indices = @transform_0, window_bounds = array<i64: 1, 8, 32>}, {pipeline_mode = #tpu.pipeline_mode<synchronous>, transform_indices = @transform_1, window_bounds = array<i64: 32, 96>}, {transform_indices = @transform_2, window_bounds = array<i64: 1, 12, 8, 8>}]} {
    %c0 = arith.constant 0 : index
    %c0_0 = arith.constant 0 : index
    %c0_1 = arith.constant 0 : index
    %0 = vector.load %arg2[%c0, %c0_0, %c0_1] : memref<1x8x32xf32, #tpu.memory_space<vmem>>, vector<1x8x32xf32>
    %1 = vector.shape_cast %0 : vector<1x8x32xf32> to vector<8x32xf32>
    %c0_2 = arith.constant 0 : index
    %c0_3 = arith.constant 0 : index
    %2 = vector.load %arg3[%c0_2, %c0_3] : memref<32x96xf32, #tpu.memory_space<vmem>>, vector<32x96xf32>
    %cst = arith.constant dense<0.000000e+00> : vector<8x96xf32>
    %3 = tpu.matmul %1, %2, %cst {dimension_numbers = #tpu.dot_dimension_numbers<[1], [0], [0], [1], [0, 0, 1, 1], [], []>} : vector<8x32xf32>, vector<32x96xf32>, vector<8x96xf32> -> vector<8x96xf32>
    %4 = vector.extract_strided_slice %3 {offsets = [0, 0], sizes = [8, 8], strides = [1, 1]} : vector<8x96xf32> to vector<8x8xf32>
    %c0_4 = arith.constant 0 : index
    %c0_5 = arith.constant 0 : index
    %c0_6 = arith.constant 0 : index
    %c0_7 = arith.constant 0 : index
    %5 = vector.load %arg4[%c0_4, %c0_5, %c0_6, %c0_7] : memref<1x12x8x8xf32, #tpu.memory_space<vmem>>, vector<1x1x8x8xf32>
    %6 = vector.shape_cast %5 : vector<1x1x8x8xf32> to vector<8x8xf32>
    %7 = vector.shape_cast %4 : vector<8x8xf32> to vector<1x1x8x8xf32>
    tpu.vector_store %arg4[%c0_4, %c0_5, %c0_6, %c0_7], %7 {strides = array<i32>} : memref<1x12x8x8xf32, #tpu.memory_space<vmem>>, vector<1x1x8x8xf32>,
    %8 = vector.extract_strided_slice %3 {offsets = [0, 8], sizes = [8, 8], strides = [1, 1]} : vector<8x96xf32> to vector<8x8xf32>
    %c0_8 = arith.constant 0 : index
    %c1 = arith.constant 1 : index
    %c0_9 = arith.constant 0 : index
    %c0_10 = arith.constant 0 : index
    %9 = vector.load %arg4[%c0_8, %c1, %c0_9, %c0_10] : memref<1x12x8x8xf32, #tpu.memory_space<vmem>>, vector<1x1x8x8xf32>
    %10 = vector.shape_cast %9 : vector<1x1x8x8xf32> to vector<8x8xf32>
    %11 = vector.shape_cast %8 : vector<8x8xf32> to vector<1x1x8x8xf32>
    tpu.vector_store %arg4[%c0_8, %c1, %c0_9, %c0_10], %11 {strides = array<i32>} : memref<1x12x8x8xf32, #tpu.memory_space<vmem>>, vector<1x1x8x8xf32>,
    %12 = vector.extract_strided_slice %3 {offsets = [0, 16], sizes = [8, 8], strides = [1, 1]} : vector<8x96xf32> to vector<8x8xf32>
    %c0_11 = arith.constant 0 : index
    %c2 = arith.constant 2 : index
    %c0_12 = arith.constant 0 : index
    %c0_13 = arith.constant 0 : index
    %13 = vector.load %arg4[%c0_11, %c2, %c0_12, %c0_13] : memref<1x12x8x8xf32, #tpu.memory_space<vmem>>, vector<1x1x8x8xf32>
    %14 = vector.shape_cast %13 : vector<1x1x8x8xf32> to vector<8x8xf32>
    %15 = vector.shape_cast %12 : vector<8x8xf32> to vector<1x1x8x8xf32>
    tpu.vector_store %arg4[%c0_11, %c2, %c0_12, %c0_13], %15 {strides = array<i32>} : memref<1x12x8x8xf32, #tpu.memory_space<vmem>>, vector<1x1x8x8xf32>,
    %16 = vector.extract_strided_slice %3 {offsets = [0, 24], sizes = [8, 8], strides = [1, 1]} : vector<8x96xf32> to vector<8x8xf32>
    %c0_14 = arith.constant 0 : index
    %c3 = arith.constant 3 : index
    %c0_15 = arith.constant 0 : index
    %c0_16 = arith.constant 0 : index
    %17 = vector.load %arg4[%c0_14, %c3, %c0_15, %c0_16] : memref<1x12x8x8xf32, #tpu.memory_space<vmem>>, vector<1x1x8x8xf32>
    %18 = vector.shape_cast %17 : vector<1x1x8x8xf32> to vector<8x8xf32>
    %19 = vector.shape_cast %16 : vector<8x8xf32> to vector<1x1x8x8xf32>
    tpu.vector_store %arg4[%c0_14, %c3, %c0_15, %c0_16], %19 {strides = array<i32>} : memref<1x12x8x8xf32, #tpu.memory_space<vmem>>, vector<1x1x8x8xf32>,
    %20 = vector.extract_strided_slice %3 {offsets = [0, 32], sizes = [8, 8], strides = [1, 1]} : vector<8x96xf32> to vector<8x8xf32>
    %c0_17 = arith.constant 0 : index
    %c4 = arith.constant 4 : index
    %c0_18 = arith.constant 0 : index
    %c0_19 = arith.constant 0 : index
    %21 = vector.load %arg4[%c0_17, %c4, %c0_18, %c0_19] : memref<1x12x8x8xf32, #tpu.memory_space<vmem>>, vector<1x1x8x8xf32>
    %22 = vector.shape_cast %21 : vector<1x1x8x8xf32> to vector<8x8xf32>
    %23 = vector.shape_cast %20 : vector<8x8xf32> to vector<1x1x8x8xf32>
    tpu.vector_store %arg4[%c0_17, %c4, %c0_18, %c0_19], %23 {strides = array<i32>} : memref<1x12x8x8xf32, #tpu.memory_space<vmem>>, vector<1x1x8x8xf32>,
    %24 = vector.extract_strided_slice %3 {offsets = [0, 40], sizes = [8, 8], strides = [1, 1]} : vector<8x96xf32> to vector<8x8xf32>
    %c0_20 = arith.constant 0 : index
    %c5 = arith.constant 5 : index
    %c0_21 = arith.constant 0 : index
    %c0_22 = arith.constant 0 : index
    %25 = vector.load %arg4[%c0_20, %c5, %c0_21, %c0_22] : memref<1x12x8x8xf32, #tpu.memory_space<vmem>>, vector<1x1x8x8xf32>
    %26 = vector.shape_cast %25 : vector<1x1x8x8xf32> to vector<8x8xf32>
    %27 = vector.shape_cast %24 : vector<8x8xf32> to vector<1x1x8x8xf32>
    tpu.vector_store %arg4[%c0_20, %c5, %c0_21, %c0_22], %27 {strides = array<i32>} : memref<1x12x8x8xf32, #tpu.memory_space<vmem>>, vector<1x1x8x8xf32>,
    %28 = vector.extract_strided_slice %3 {offsets = [0, 48], sizes = [8, 8], strides = [1, 1]} : vector<8x96xf32> to vector<8x8xf32>
    %c0_23 = arith.constant 0 : index
    %c6 = arith.constant 6 : index
    %c0_24 = arith.constant 0 : index
    %c0_25 = arith.constant 0 : index
    %29 = vector.load %arg4[%c0_23, %c6, %c0_24, %c0_25] : memref<1x12x8x8xf32, #tpu.memory_space<vmem>>, vector<1x1x8x8xf32>
    %30 = vector.shape_cast %29 : vector<1x1x8x8xf32> to vector<8x8xf32>
    %31 = vector.shape_cast %28 : vector<8x8xf32> to vector<1x1x8x8xf32>
    tpu.vector_store %arg4[%c0_23, %c6, %c0_24, %c0_25], %31 {strides = array<i32>} : memref<1x12x8x8xf32, #tpu.memory_space<vmem>>, vector<1x1x8x8xf32>,
    %32 = vector.extract_strided_slice %3 {offsets = [0, 56], sizes = [8, 8], strides = [1, 1]} : vector<8x96xf32> to vector<8x8xf32>
    %c0_26 = arith.constant 0 : index
    %c7 = arith.constant 7 : index
    %c0_27 = arith.constant 0 : index
    %c0_28 = arith.constant 0 : index
    %33 = vector.load %arg4[%c0_26, %c7, %c0_27, %c0_28] : memref<1x12x8x8xf32, #tpu.memory_space<vmem>>, vector<1x1x8x8xf32>
    %34 = vector.shape_cast %33 : vector<1x1x8x8xf32> to vector<8x8xf32>
    %35 = vector.shape_cast %32 : vector<8x8xf32> to vector<1x1x8x8xf32>
    tpu.vector_store %arg4[%c0_26, %c7, %c0_27, %c0_28], %35 {strides = array<i32>} : memref<1x12x8x8xf32, #tpu.memory_space<vmem>>, vector<1x1x8x8xf32>,
    %36 = vector.extract_strided_slice %3 {offsets = [0, 64], sizes = [8, 8], strides = [1, 1]} : vector<8x96xf32> to vector<8x8xf32>
    %c0_29 = arith.constant 0 : index
    %c8 = arith.constant 8 : index
    %c0_30 = arith.constant 0 : index
    %c0_31 = arith.constant 0 : index
    %37 = vector.load %arg4[%c0_29, %c8, %c0_30, %c0_31] : memref<1x12x8x8xf32, #tpu.memory_space<vmem>>, vector<1x1x8x8xf32>
    %38 = vector.shape_cast %37 : vector<1x1x8x8xf32> to vector<8x8xf32>
    %39 = vector.shape_cast %36 : vector<8x8xf32> to vector<1x1x8x8xf32>
    tpu.vector_store %arg4[%c0_29, %c8, %c0_30, %c0_31], %39 {strides = array<i32>} : memref<1x12x8x8xf32, #tpu.memory_space<vmem>>, vector<1x1x8x8xf32>,
    %40 = vector.extract_strided_slice %3 {offsets = [0, 72], sizes = [8, 8], strides = [1, 1]} : vector<8x96xf32> to vector<8x8xf32>
    %c0_32 = arith.constant 0 : index
    %c9 = arith.constant 9 : index
    %c0_33 = arith.constant 0 : index
    %c0_34 = arith.constant 0 : index
    %41 = vector.load %arg4[%c0_32, %c9, %c0_33, %c0_34] : memref<1x12x8x8xf32, #tpu.memory_space<vmem>>, vector<1x1x8x8xf32>
    %42 = vector.shape_cast %41 : vector<1x1x8x8xf32> to vector<8x8xf32>
    %43 = vector.shape_cast %40 : vector<8x8xf32> to vector<1x1x8x8xf32>
    tpu.vector_store %arg4[%c0_32, %c9, %c0_33, %c0_34], %43 {strides = array<i32>} : memref<1x12x8x8xf32, #tpu.memory_space<vmem>>, vector<1x1x8x8xf32>,
    %44 = vector.extract_strided_slice %3 {offsets = [0, 80], sizes = [8, 8], strides = [1, 1]} : vector<8x96xf32> to vector<8x8xf32>
    %c0_35 = arith.constant 0 : index
    %c10 = arith.constant 10 : index
    %c0_36 = arith.constant 0 : index
    %c0_37 = arith.constant 0 : index
    %45 = vector.load %arg4[%c0_35, %c10, %c0_36, %c0_37] : memref<1x12x8x8xf32, #tpu.memory_space<vmem>>, vector<1x1x8x8xf32>
    %46 = vector.shape_cast %45 : vector<1x1x8x8xf32> to vector<8x8xf32>
    %47 = vector.shape_cast %44 : vector<8x8xf32> to vector<1x1x8x8xf32>
    tpu.vector_store %arg4[%c0_35, %c10, %c0_36, %c0_37], %47 {strides = array<i32>} : memref<1x12x8x8xf32, #tpu.memory_space<vmem>>, vector<1x1x8x8xf32>,
    %48 = vector.extract_strided_slice %3 {offsets = [0, 88], sizes = [8, 8], strides = [1, 1]} : vector<8x96xf32> to vector<8x8xf32>
    %c0_38 = arith.constant 0 : index
    %c11 = arith.constant 11 : index
    %c0_39 = arith.constant 0 : index
    %c0_40 = arith.constant 0 : index
    %49 = vector.load %arg4[%c0_38, %c11, %c0_39, %c0_40] : memref<1x12x8x8xf32, #tpu.memory_space<vmem>>, vector<1x1x8x8xf32>
    %50 = vector.shape_cast %49 : vector<1x1x8x8xf32> to vector<8x8xf32>
    %51 = vector.shape_cast %48 : vector<8x8xf32> to vector<1x1x8x8xf32>
    tpu.vector_store %arg4[%c0_38, %c11, %c0_39, %c0_40], %51 {strides = array<i32>} : memref<1x12x8x8xf32, #tpu.memory_space<vmem>>, vector<1x1x8x8xf32>,
    return
  }
  func.func @transform_0(%arg0: i32, %arg1: i32) -> (i32, i32, i32) {
    %c0_i32 = arith.constant 0 : i32
    %c0_i32_0 = arith.constant 0 : i32
    return %arg0, %arg1, %c0_i32 : i32, i32, i32
  }
  func.func @transform_1(%arg0: i32, %arg1: i32) -> (i32, i32) {
    %c0_i32 = arith.constant 0 : i32
    %c0_i32_0 = arith.constant 0 : i32
    %c0_i32_1 = arith.constant 0 : i32
    return %c0_i32, %c0_i32_0 : i32, i32
  }
  func.func @transform_2(%arg0: i32, %arg1: i32) -> (i32, i32, i32, i32) {
    %c0_i32 = arith.constant 0 : i32
    %c0_i32_0 = arith.constant 0 : i32
    %c0_i32_1 = arith.constant 0 : i32
    return %arg0, %c0_i32, %arg1, %c0_i32_0 : i32, i32, i32, i32
  }
}

</mosaic_0001>

<bundles_post_ra>
// kernel: tpu_custom_call.1
= control target key start
LH: loop header
LB: loop body
LE: loop exit
PB: predicated region body
PF: predicated region fallthrough
CT: control target
= control target key end

     0   :  { %7 = vsyncpa [#allocation3], 0  ;;  %s848_s0 = inlined_call_operand.hbm [shape: f32[2,8,32], index: 0, kind: input, shape index: {}]   ;;  %s849_s1 = inlined_call_operand.hbm [shape: f32[32,96], index: 1, kind: input, shape index: {}]   ;;  %s850_s2 = inlined_call_operand.vmem [shape: f32[2,12,8,8], index: 2, kind: output, shape index: {}]  }
   0x1   :  { %9 = vsyncpa [#allocation3 + $0x1], 0 }
   0x2   :  { %10 = vsyncpa [#allocation5], 0  ;;  %s701_s9 = smov 0   ;;  %s703_s10 = smov 0  }
   0x3   :  { %s705_s11 = smov 0   ;;  %s707_s12 = smov 0  }
   0x4   :  { %s709_s13 = smov 0   ;;  %s711_s14 = smov 0  }
   0x5 LB: > { %s436_s15 = sadd.s32 4294967295, %s667_s14   ;;  %p50_p0 = scmp.ne.s32.totalorder %s651_s10, %s647_s9  ;;  %s667_s14 = sphi %s711_s14, %s16_s14   ;;  %s663_s13 = sphi %s709_s13, %s860_s13   ;;  %s659_s12 = sphi %s707_s12, %s859_s12   ;;  %s655_s11 = sphi %s705_s11, %s858_s11   ;;  %s651_s10 = sphi %s703_s10, %s857_s10   ;;  %s647_s9 = sphi %s701_s9, %s856_s9  }
   0x6   : > { %p731_p1 = scmp.eq.s32.totalorder %s436_s15, 0  ;;  %p438_p2 = scmp.ge.s32.totalorder %s667_s14, 1 }
   0x7   : > { %p110_p3 = scmp.lt.s32.totalorder %s667_s14, 3  ;;  %s669_s19 = smov [#allocation4]  }
   0x8   : > { %p739_p4 = por %p731_p1, %p50_p0  ;;  %s122_s20 = sshll.u32 %s669_s19, 4  ;;  %s123_s20 = int_to_ptr.vmem [resolvable:$true] %s122_s20 }
   0x9   : > { %p743_p5 = pnand %p438_p2, %p110_p3  ;;  %s28_s22 = sadd.s32 1, %s663_s13 }
   0xa   : > { %s570_s23 = scalar_lea.vmem %s123_s20, 512  ;;  %p578_p12 = scmp.lt.s32.totalorder %s123_s20, %s123_s20 }
   0xb   : > { %p484_p6 = pneg %p743_p5  ;;  %p571_p9 = scmp.ne.s32.totalorder %s123_s20, %s570_s23 }
   0xc   : > { %p579_p13 = scmp.lt.s32.totalorder %s570_s23, %s570_s23 }
   0xd   : > { %p751_p7 = pnand %p484_p6, %p731_p1 }
   0xe   : > { %p580_p0 = por %p579_p13, %p578_p12 }
   0xf   : > { %p561_p8 = pneg %p751_p7 }
  0x11   : > { %p573_p10 = pnand %p571_p9, %p561_p8 }
  0x13   : > { %p574_p11 = pneg %p573_p10 }
  0x15   : > { %p581_p2 = pnand %p580_p0, %p574_p11 }
  0x17   : > { %584 = shalt.err (!%p581_p2)
}
  0x18   : > { %s670_s24 = smov 128   ;;  %s671_s25 = smov 8  }
  0x19   : > { %487 = dma.hbm_to_vmem [thread:$0]  (!%p751_p7), %s849_s1, 512, %s123_s20, [#allocation5], %s670_s24, %s670_s24, %s671_s25  }
  0x1a   : > { %p30_p3 = scmp.ge.s32.totalorder %s28_s22, 2  ;;  %s37_s28 = sadd.s32 1, %s655_s11 }
  0x1b   : > { %p44_p6 = scmp.ne.s32.totalorder %s655_s11, %s651_s10  ;;  %p45_p8 = scmp.eq.s32.totalorder %s667_s14, 0 }
  0x1c   : > { %s862_s22 = smov (%p30_p3, %s28_s22), 0  ;;  %p493_p10 = scmp.lt.s32.totalorder %s667_s14, 2 }
  0x1d   : > { %p46_p9 = por %p45_p8, %p44_p6  ;;  %s32_s29 = ssub.s32 %s663_s13, %s862_s22 }
  0x1e   : > { %s136_s30 = sand.u32 1, %s655_s11   ;;  %p35_p11 = scmp.eq.s32.totalorder %s32_s29, 0 }
  0x1f   : > { %s441_s3 = sshll.u32 %s136_s30, 3  ;;  %s442_s4 = sshll.u32 %s663_s13, 7 }
  0x20   : > { %s775_s5 = scalar_select %p35_p11, %s655_s11, %s37_s28  }
  0x21   : > { %s146_s8 = scalar_lea.hbm %s848_s0, %s442_s4  ;;  %s140_s9 = scalar_lea.vmem [#allocation2], %s441_s3 }
  0x22   : > { %s148_s15 = sshll.u32 %s140_s9, 4  ;;  %p780_p7 = pnand %p493_p10, %p46_p9  ;;  %s149_s15 = int_to_ptr.vmem [resolvable:$true] %s148_s15 }
  0x23   : > { %s137_s20 = scalar_lea.sflag [#allocation3], %s136_s30  ;;  %s598_s21 = scalar_lea.vmem %s149_s15, 128 }
  0x24   : > { %p587_p12 = pneg %p780_p7  ;;  %p599_p13 = scmp.ne.s32.totalorder %s149_s15, %s598_s21 }
  0x25   : > { %s672_s23 = smov [#allocation2]  }
  0x26   : > { %p601_p0 = pnand %p599_p13, %p587_p12  ;;  %s603_s24 = sshll.u32 %s672_s23, 4  ;;  %s604_s24 = int_to_ptr.vmem [resolvable:$false] %s603_s24 }
  0x27   : > { %s605_s25 = scalar_lea.vmem %s604_s24, 256  ;;  %p606_p3 = scmp.lt.s32.totalorder %s149_s15, %s604_s24 }
  0x28   : > { %p602_p2 = pneg %p601_p0  ;;  %p607_p6 = scmp.lt.s32.totalorder %s605_s25, %s598_s21 }
  0x2a   : > { %p608_p8 = por %p607_p6, %p606_p3 }
  0x2c   : > { %p609_p9 = pnand %p608_p8, %p602_p2 }
  0x2e   : > { %612 = shalt.err (!%p609_p9)
}
  0x2f   : > { %491 = dma.hbm_to_vmem [thread:$0]  (!%p780_p7), %s146_s8, 128, %s149_s15, %s137_s20  }
  0x30   : > { %157 = sbr.rel (%p743_p5) target bundleno = 394 (0x18a), region = 28  ;;  %s159_s26 = sand.u32 (!%p743_p5), 1, %s651_s10  }
  0x31   : > { %s444_s27 = sshll.u32 (!%p743_p5), %s159_s26, 3  ;;  %s160_s28 = scalar_lea.sflag (!%p743_p5), [#allocation3], %s159_s26 }
  0x32   : > { %s163_s29 = scalar_lea.vmem (!%p743_p5), [#allocation2], %s444_s27 }
  0x35   : > { %638 = dma.done.wait (%p739_p4), %s160_s28, 128  }
  0x36   : > { %640 = vsyncadd (%p739_p4), %s160_s28, 4294967168 }
  0x37   : > { %642 = dma.done.wait (%p731_p1), [#allocation5], 512  }
  0x38   : > { %644 = vsyncadd (%p731_p1), [#allocation5], 4294966784  ;;  %v673_v0 = vmov 0.0   ;;  %vm674_vm0 = vmmov 0   ;;  %v203_v1 = vld [vmem:[#allocation4 + $0x18] sm:$0xff]  ;;  %v202_v2 = vld [vmem:[#allocation4 + $0x10] sm:$0xff] }
  0x39   : > { %466 = vmatprep.subr.mxu0 %v673_v0  ;;  %474 = vmatprep.mubr.msk.f32.mxu0 %vm674_vm0, %v673_v0  ;;  %v201_v3 = vld [vmem:[#allocation4 + $0x8] sm:$0xff]  ;;  %v200_v4 = vld [vmem:[#allocation4] sm:$0xff]  ;;  %v199_v5 = vld [vmem:[%s163_s29] sm:$0xff]  ;;  %vm204_vm1 = vcmask 261120   ;;  %p191_p1 = scmp.lt.s32.totalorder %s659_s12, 1  ;;  %vm278_vm2 = vcmask 64512  }
  0x3a   : > { %467 = vmatpush3.msra.mxu0 %v203_v1  ;;  %s675_s3 = smov 104   ;;  %s676_s4 = smov 120  }
  0x3b   : > { %468 = vmatprep.subr.mxu0 %v673_v0  ;;  %s864_s12 = smov (!%p191_p1, %s659_s12), 1  ;;  %s677_s6 = smov 96  }
  0x3c   : > { %469 = vmatpush3.msra.mxu0 %v202_v2  ;;  %s477_s16 = smul.u32 96, %s864_s12  ;;  %s678_s7 = smov 112  }
  0x3d   : > { %470 = vmatprep.subr.mxu0 %v673_v0  ;;  %s679_s12 = smov 80   ;;  %s680_s8 = smov 88  }
  0x3e   : > { %471 = vmatpush3.msra.mxu0 %v201_v3  ;;  %s804_s30 = scalar_lea.vmem %s850_s2, %s477_s16  ;;  %s681_s9 = smov 64  }
  0x3f   : > { %472 = vmatprep.subr.mxu0 %v673_v0  ;;  %s682_s15 = smov 72   ;;  %s683_s19 = smov 48  }
  0x40   : > { %473 = vmatpush3.msra.mxu0 %v200_v4  ;;  %s684_s20 = smov 56   ;;  %s685_s21 = smov 40  }
  0x41   : > { %475 = vmatmul.mubr.msk.f32.vlgmr.msra.gmra.mxu0 %vm204_vm1, %v199_v5 }
 0x101   : > { %v274_v6 = vpop.f32.mrf.mxu0 }
 0x102   : > { %291 = vrot.lane.b32.xlu1 %v274_v6, %s675_s3  ;;  %281 = vrot.lane.b32.xlu0 %v274_v6, %s676_s4  ;;  %279 = vst.msk [vmem:[%s804_s30] sm:$0xff] %vm278_vm2, %v274_v6 }
 0x103   : > { %v476_v7 = vpop.f32.mrf.mxu0 }
 0x106   : > { %296 = vrot.lane.b32.xlu1 %v274_v6, %s677_s6  ;;  %286 = vrot.lane.b32.xlu0 %v274_v6, %s678_s7 }
 0x10a   : > { %306 = vrot.lane.b32.xlu1 %v274_v6, %s679_s12  ;;  %301 = vrot.lane.b32.xlu0 %v274_v6, %s680_s8 }
 0x10e   : > { %316 = vrot.lane.b32.xlu1 %v274_v6, %s681_s9  ;;  %311 = vrot.lane.b32.xlu0 %v274_v6, %s682_s15 }
 0x112   : > { %326 = vrot.lane.b32.xlu1 %v274_v6, %s683_s19  ;;  %321 = vrot.lane.b32.xlu0 %v274_v6, %s684_s20 }
 0x116   : > { %331 = vrot.lane.b32.xlu0 %v274_v6, %s685_s21 }
 0x174   : > { %v292_v8 = vpop.permute.xlu1 %291  ;;  %v282_v9 = vpop.permute.xlu0 %281 }
 0x175   : > { %450 = vst.msk [vmem:[%s804_s30 + $0x18] sm:$0xff] %vm278_vm2, %v292_v8  ;;  %448 = vst.msk [vmem:[%s804_s30 + $0x8] sm:$0xff] %vm278_vm2, %v282_v9 }
 0x178   : > { %v297_v10 = vpop.permute.xlu1 %296  ;;  %v287_v11 = vpop.permute.xlu0 %286 }
 0x179   : > { %451 = vst.msk [vmem:[%s804_s30 + $0x20] sm:$0xff] %vm278_vm2, %v297_v10  ;;  %449 = vst.msk [vmem:[%s804_s30 + $0x10] sm:$0xff] %vm278_vm2, %v287_v11 }
 0x17c   : > { %v307_v12 = vpop.permute.xlu1 %306  ;;  %v302_v13 = vpop.permute.xlu0 %301 }
 0x17d   : > { %453 = vst.msk [vmem:[%s804_s30 + $0x30] sm:$0xff] %vm278_vm2, %v307_v12  ;;  %452 = vst.msk [vmem:[%s804_s30 + $0x28] sm:$0xff] %vm278_vm2, %v302_v13 }
 0x180   : > { %v317_v14 = vpop.permute.xlu1 %316  ;;  %v312_v15 = vpop.permute.xlu0 %311 }
 0x181   : > { %455 = vst.msk [vmem:[%s804_s30 + $0x40] sm:$0xff] %vm278_vm2, %v317_v14  ;;  %454 = vst.msk [vmem:[%s804_s30 + $0x38] sm:$0xff] %vm278_vm2, %v312_v15 }
 0x184   : > { %v327_v16 = vpop.permute.xlu1 %326  ;;  %v322_v17 = vpop.permute.xlu0 %321 }
 0x185   : > { %457 = vst.msk [vmem:[%s804_s30 + $0x50] sm:$0xff] %vm278_vm2, %v327_v16  ;;  %456 = vst.msk [vmem:[%s804_s30 + $0x48] sm:$0xff] %vm278_vm2, %v322_v17 }
 0x188   : > { %v332_v18 = vpop.permute.xlu0 %331 }
 0x189   : > { %458 = vst.msk [vmem:[%s804_s30 + $0x58] sm:$0xff] %vm278_vm2, %v332_v18 }
 0x18a PF: > { %s16_s14 = sadd.s32 1, %s667_s14   ;;  %s856_s9 = smov %s651_s10 }
 0x18b   : > { %p13_p4 = scmp.ge.s32.totalorder %s16_s14, 4   ;;  %s857_s10 = smov %s655_s11 }
 0x18c   : > { %s858_s11 = smov %s775_s5  ;;  %s859_s12 = smov %s663_s13 }
 0x18d   : > { %s860_s13 = smov %s862_s22  ;;  %15 = sbr.rel (!%p13_p4) target bundleno = 5 (0x5), region = 83 }
 0x192   :  { %363 = vsyncpa [#allocation3], 1 }
 0x193   :  { %365 = vsyncpa [#allocation3 + $0x1], 1 }
 0x194   :  { %366 = vsyncpa [#allocation5], 1 }

</bundles_post_ra>
